<compile_context>
chip_gen: v7x
topology: tpu7x:2x2x1
jax: 0.10.0
libtpu: 0.0.40
codegen_flags: <defaults>
</compile_context>

<pallas_src>
import jax
import jax.numpy as jnp
from jax.experimental import pallas as pl
from jax.experimental.pallas import tpu as pltpu

X_DIM = 1216          # 1248 - 32 (implied by the critic's Linear(1248, 64))
A_DIM = 2
TILE_B = 2048         # batch tile; shrunk automatically for tiny batches


def _round_up(n, m):
    return ((n + m - 1) // m) * m


def critic_kernel(x_ref, a_ref,
                  w1_ref, b1_ref,
                  w2_ref, b2_ref,
                  w3x_ref, w3a_ref, b3_ref,
                  w4_ref, b4_ref,
                  out_ref):
    # ---- action extractor ----
    # Linear(2, 64): K=2 wastes the MXU -> broadcast mul-add on the VPU.
    a = a_ref[...]                                     # (TILE_B, 2)
    w1 = w1_ref[...]                                   # (2, 64) f32
    h1 = (a[:, 0:1] * w1[0:1, :]
          + a[:, 1:2] * w1[1:2, :]
          + b1_ref[...])
    h1 = jnp.maximum(h1, 0.0)                          # Dropout -> id, ReLU

    # Linear(64, 32): small MXU matmul.
    h2 = jnp.dot(h1, w2_ref[...],
                 preferred_element_type=jnp.float32) + b2_ref[...]
    h2 = jnp.maximum(h2, 0.0)                          # Dropout -> id, ReLU

    # ---- critic ----
    # concat([x, h2], -1) @ W3 + b3  ==  x @ W3x + h2 @ W3a + b3   (exact)
    x = x_ref[...]                                     # (TILE_B, 1216) bf16
    h3 = (jnp.dot(x, w3x_ref[...], preferred_element_type=jnp.float32)
          + jnp.dot(h2, w3a_ref[...], preferred_element_type=jnp.float32)
          + b3_ref[...])
    h3 = jnp.maximum(h3, 0.0)                          # Dropout -> id, ReLU

    # Linear(64, 1): N=1 matmul wastes the MXU -> VPU mul + lane reduction.
    # Lane-dense store: one (1, TILE_B) row per grid step.
    w4 = w4_ref[...]                                   # (1, 64) f32 (transposed row)
    q = jnp.sum(h3 * w4, axis=-1) + b4_ref[0]          # (TILE_B,)
    out_ref[0, :] = q


def critic_forward(x, a, params, *, tile_b=TILE_B):
    """x: (B, 1216) (bf16 preferred), a: (B, 2) -> (B, 1) f32.

    No wrapper-side pad/cast passes over x: the last grid block may be ragged;
    rows >= B produce garbage that is discarded by the final slice."""
    B = x.shape[0]
    tile_b = min(tile_b, _round_up(B, 8))              # small-batch friendly
    num_tiles = (B + tile_b - 1) // tile_b

    def const_spec(arr):
        return pl.BlockSpec(arr.shape, lambda i: (0, 0))

    w_args = (params["w1"], params["b1"],
              params["w2"], params["b2"],
              params["w3x"], params["w3a"], params["b3"],
              params["w4"])

    out = pl.pallas_call(
        critic_kernel,
        out_shape=jax.ShapeDtypeStruct((num_tiles, tile_b), jnp.float32),
        grid=(num_tiles,),
        in_specs=[
            pl.BlockSpec((tile_b, X_DIM), lambda i: (i, 0)),   # x : streamed
            pl.BlockSpec((tile_b, A_DIM), lambda i: (i, 0)),   # a : streamed
            *[const_spec(w) for w in w_args],                  # params: VMEM-resident
            pl.BlockSpec(memory_space=pltpu.MemorySpace.SMEM), # b4 scalar
        ],
        out_specs=pl.BlockSpec((1, tile_b), lambda i: (i, 0)), # lane-dense output
        compiler_params=pltpu.CompilerParams(
            dimension_semantics=("parallel",),                 # v7x: shard batch across TCs
            vmem_limit_bytes=48 * 1024 * 1024),                # 2048-row x double buffer on v5e too
    )(x, a, *w_args, params["b4"])
    return out.reshape(-1)[:B].reshape(B, 1)


def init_params(key):
    """PyTorch-Linear-style uniform(-1/sqrt(fan_in), 1/sqrt(fan_in)) init.

    Weights stored transposed as (in_features, out_features); w3 is split into
    (w3x, w3a); the bandwidth-critical w3x is bf16, everything else f32;
    w4 is stored as a (1, 64) row for the VPU reduction; b4 is a (1,) scalar."""
    def linear(k, fan_in, fan_out):
        kw, kb = jax.random.split(k)
        bound = 1.0 / jnp.sqrt(jnp.float32(fan_in))
        w = jax.random.uniform(kw, (fan_in, fan_out), jnp.float32, -bound, bound)
        b = jax.random.uniform(kb, (1, fan_out), jnp.float32, -bound, bound)
        return w, b

    k1, k2, k3, k4 = jax.random.split(key, 4)
    w1, b1 = linear(k1, A_DIM, 64)        # action_extractor Linear(2, 64)
    w2, b2 = linear(k2, 64, 32)           # action_extractor Linear(64, 32)
    w3, b3 = linear(k3, X_DIM + 32, 64)   # critic Linear(1248, 64)
    w4, b4 = linear(k4, 64, 1)            # critic Linear(64, 1)
    return {
        "w1": w1, "b1": b1,
        "w2": w2, "b2": b2,
        "w3x": w3[:X_DIM, :].astype(jnp.bfloat16),
        "w3a": w3[X_DIM:, :], "b3": b3,
        "w4": w4.T,                        # (1, 64) row
        "b4": b4.reshape(-1),              # (1,) scalar for SMEM
    }


def critic_ref(x, a, p):
    """Pure-JAX f32 reference (bf16 tensors upcast) for correctness checking."""
    xf = x.astype(jnp.float32)
    af = a.astype(jnp.float32)
    h = jnp.maximum(af @ p["w1"] + p["b1"], 0.0)
    h = jnp.maximum(h @ p["w2"] + p["b2"], 0.0)
    o = jnp.concatenate([xf, h], axis=-1)
    w3 = jnp.concatenate([p["w3x"].astype(jnp.float32), p["w3a"]], axis=0)
    o = jnp.maximum(o @ w3 + p["b3"], 0.0)
    return o @ p["w4"].T + p["b4"]


if __name__ == "__main__":
    key = jax.random.PRNGKey(0)
    kx, ka, kp = jax.random.split(key, 3)

    B = 2
    # x and a arrive in bf16 (the kernel's streaming dtype) -- no wrapper casts.
    x = jax.random.normal(kx, (B, X_DIM), jnp.float32).astype(jnp.bfloat16)
    a = jax.random.normal(ka, (B, A_DIM), jnp.float32).astype(jnp.bfloat16)
    params = init_params(kp)

    out = critic_forward(x, a, params)
    out = jax.block_until_ready(out)

    ref = critic_ref(x, a, params)
    assert out.shape == (B, 1), out.shape
    assert jnp.allclose(out, ref, atol=1e-3, rtol=1e-3), (out, ref)

    print("KERNEL_OK")
</pallas_src>

<mosaic_0001>
module attributes {stable_mosaic.version = 11 : i64} {
  func.func @critic_kernel(%arg0: i32, %arg1: memref<8x1216xbf16, #tpu.memory_space<vmem>>, %arg2: memref<8x2xbf16, #tpu.memory_space<vmem>>, %arg3: memref<2x64xf32, #tpu.memory_space<vmem>>, %arg4: memref<1x64xf32, #tpu.memory_space<vmem>>, %arg5: memref<64x32xf32, #tpu.memory_space<vmem>>, %arg6: memref<1x32xf32, #tpu.memory_space<vmem>>, %arg7: memref<1216x64xbf16, #tpu.memory_space<vmem>>, %arg8: memref<32x64xf32, #tpu.memory_space<vmem>>, %arg9: memref<1x64xf32, #tpu.memory_space<vmem>>, %arg10: memref<1x64xf32, #tpu.memory_space<vmem>>, %arg11: memref<1xf32, #tpu.memory_space<smem>>, %arg12: memref<1x8xf32, #tpu.memory_space<vmem>>) attributes {dimension_semantics = [#tpu.dimension_semantics<parallel>], iteration_bounds = array<i64: 1>, scalar_prefetch = 0 : i64, scratch_operands = 0 : i64, tpu.core_type = #tpu.core_type<tc>, window_params = [{transform_indices = @transform_0, window_bounds = array<i64: 8, 1216>}, {transform_indices = @transform_1, window_bounds = array<i64: 8, 2>}, {pipeline_mode = #tpu.pipeline_mode<synchronous>, transform_indices = @transform_2, window_bounds = array<i64: 2, 64>}, {pipeline_mode = #tpu.pipeline_mode<synchronous>, transform_indices = @transform_3, window_bounds = array<i64: 1, 64>}, {pipeline_mode = #tpu.pipeline_mode<synchronous>, transform_indices = @transform_4, window_bounds = array<i64: 64, 32>}, {pipeline_mode = #tpu.pipeline_mode<synchronous>, transform_indices = @transform_5, window_bounds = array<i64: 1, 32>}, {pipeline_mode = #tpu.pipeline_mode<synchronous>, transform_indices = @transform_6, window_bounds = array<i64: 1216, 64>}, {pipeline_mode = #tpu.pipeline_mode<synchronous>, transform_indices = @transform_7, window_bounds = array<i64: 32, 64>}, {pipeline_mode = #tpu.pipeline_mode<synchronous>, transform_indices = @transform_8, window_bounds = array<i64: 1, 64>}, {pipeline_mode = #tpu.pipeline_mode<synchronous>, transform_indices = @transform_9, window_bounds = array<i64: 1, 64>}, {transform_indices = @transform_10, window_bounds = array<i64: 1>}, {transform_indices = @transform_11, window_bounds = array<i64: 1, 8>}]} {
    %c0 = arith.constant 0 : index
    %c0_0 = arith.constant 0 : index
    %0 = vector.load %arg2[%c0, %c0_0] : memref<8x2xbf16, #tpu.memory_space<vmem>>, vector<8x2xbf16>
    %c0_1 = arith.constant 0 : index
    %c0_2 = arith.constant 0 : index
    %1 = vector.load %arg3[%c0_1, %c0_2] : memref<2x64xf32, #tpu.memory_space<vmem>>, vector<2x64xf32>
    %2 = vector.extract_strided_slice %0 {offsets = [0, 0], sizes = [8, 1], strides = [1, 1]} : vector<8x2xbf16> to vector<8x1xbf16>
    %3 = vector.extract_strided_slice %1 {offsets = [0, 0], sizes = [1, 64], strides = [1, 1]} : vector<2x64xf32> to vector<1x64xf32>
    %4 = arith.extf %2 : vector<8x1xbf16> to vector<8x1xf32>
    %5 = vector.broadcast %4 : vector<8x1xf32> to vector<8x64xf32>
    %6 = vector.broadcast %3 : vector<1x64xf32> to vector<8x64xf32>
    %7 = arith.mulf %5, %6 : vector<8x64xf32>
    %8 = vector.extract_strided_slice %0 {offsets = [0, 1], sizes = [8, 1], strides = [1, 1]} : vector<8x2xbf16> to vector<8x1xbf16>
    %9 = vector.extract_strided_slice %1 {offsets = [1, 0], sizes = [1, 64], strides = [1, 1]} : vector<2x64xf32> to vector<1x64xf32>
    %10 = arith.extf %8 : vector<8x1xbf16> to vector<8x1xf32>
    %11 = vector.broadcast %10 : vector<8x1xf32> to vector<8x64xf32>
    %12 = vector.broadcast %9 : vector<1x64xf32> to vector<8x64xf32>
    %13 = arith.mulf %11, %12 : vector<8x64xf32>
    %14 = arith.addf %7, %13 : vector<8x64xf32>
    %c0_3 = arith.constant 0 : index
    %c0_4 = arith.constant 0 : index
    %15 = vector.load %arg4[%c0_3, %c0_4] : memref<1x64xf32, #tpu.memory_space<vmem>>, vector<1x64xf32>
    %16 = vector.broadcast %15 : vector<1x64xf32> to vector<8x64xf32>
    %17 = arith.addf %14, %16 : vector<8x64xf32>
    %cst = arith.constant 0.000000e+00 : f32
    %18 = vector.broadcast %cst : f32 to vector<8x64xf32>
    %19 = arith.maximumf %17, %18 : vector<8x64xf32>
    %c0_5 = arith.constant 0 : index
    %c0_6 = arith.constant 0 : index
    %20 = vector.load %arg5[%c0_5, %c0_6] : memref<64x32xf32, #tpu.memory_space<vmem>>, vector<64x32xf32>
    %cst_7 = arith.constant dense<0.000000e+00> : vector<8x32xf32>
    %21 = tpu.matmul %19, %20, %cst_7 {dimension_numbers = #tpu.dot_dimension_numbers<[1], [0], [0], [1], [0, 0, 1, 1], [], []>} : vector<8x64xf32>, vector<64x32xf32>, vector<8x32xf32> -> vector<8x32xf32>
    %c0_8 = arith.constant 0 : index
    %c0_9 = arith.constant 0 : index
    %22 = vector.load %arg6[%c0_8, %c0_9] : memref<1x32xf32, #tpu.memory_space<vmem>>, vector<1x32xf32>
    %23 = vector.broadcast %22 : vector<1x32xf32> to vector<8x32xf32>
    %24 = arith.addf %21, %23 : vector<8x32xf32>
    %cst_10 = arith.constant 0.000000e+00 : f32
    %25 = vector.broadcast %cst_10 : f32 to vector<8x32xf32>
    %26 = arith.maximumf %24, %25 : vector<8x32xf32>
    %c0_11 = arith.constant 0 : index
    %c0_12 = arith.constant 0 : index
    %27 = vector.load %arg1[%c0_11, %c0_12] : memref<8x1216xbf16, #tpu.memory_space<vmem>>, vector<8x1216xbf16>
    %c0_13 = arith.constant 0 : index
    %c0_14 = arith.constant 0 : index
    %28 = vector.load %arg7[%c0_13, %c0_14] : memref<1216x64xbf16, #tpu.memory_space<vmem>>, vector<1216x64xbf16>
    %cst_15 = arith.constant dense<0.000000e+00> : vector<8x64xf32>
    %29 = tpu.matmul %27, %28, %cst_15 {dimension_numbers = #tpu.dot_dimension_numbers<[1], [0], [0], [1], [0, 0, 1, 1], [], []>} : vector<8x1216xbf16>, vector<1216x64xbf16>, vector<8x64xf32> -> vector<8x64xf32>
    %c0_16 = arith.constant 0 : index
    %c0_17 = arith.constant 0 : index
    %30 = vector.load %arg8[%c0_16, %c0_17] : memref<32x64xf32, #tpu.memory_space<vmem>>, vector<32x64xf32>
    %cst_18 = arith.constant dense<0.000000e+00> : vector<8x64xf32>
    %31 = tpu.matmul %26, %30, %cst_18 {dimension_numbers = #tpu.dot_dimension_numbers<[1], [0], [0], [1], [0, 0, 1, 1], [], []>} : vector<8x32xf32>, vector<32x64xf32>, vector<8x64xf32> -> vector<8x64xf32>
    %32 = arith.addf %29, %31 : vector<8x64xf32>
    %c0_19 = arith.constant 0 : index
    %c0_20 = arith.constant 0 : index
    %33 = vector.load %arg9[%c0_19, %c0_20] : memref<1x64xf32, #tpu.memory_space<vmem>>, vector<1x64xf32>
    %34 = vector.broadcast %33 : vector<1x64xf32> to vector<8x64xf32>
    %35 = arith.addf %32, %34 : vector<8x64xf32>
    %cst_21 = arith.constant 0.000000e+00 : f32
    %36 = vector.broadcast %cst_21 : f32 to vector<8x64xf32>
    %37 = arith.maximumf %35, %36 : vector<8x64xf32>
    %c0_22 = arith.constant 0 : index
    %c0_23 = arith.constant 0 : index
    %38 = vector.load %arg10[%c0_22, %c0_23] : memref<1x64xf32, #tpu.memory_space<vmem>>, vector<1x64xf32>
    %39 = vector.broadcast %38 : vector<1x64xf32> to vector<8x64xf32>
    %40 = arith.mulf %37, %39 : vector<8x64xf32>
    %cst_24 = arith.constant dense<0.000000e+00> : vector<8xf32>
    %41 = vector.multi_reduction <add>, %40, %cst_24 [1] : vector<8x64xf32> to vector<8xf32>
    %c0_25 = arith.constant 0 : index
    %42 = memref.load %arg11[%c0_25] : memref<1xf32, #tpu.memory_space<smem>>
    %43 = vector.broadcast %42 : f32 to vector<8xf32>
    %44 = arith.addf %41, %43 : vector<8xf32>
    %c0_26 = arith.constant 0 : index
    %c0_27 = arith.constant 0 : index
    %45 = vector.load %arg12[%c0_26, %c0_27] : memref<1x8xf32, #tpu.memory_space<vmem>>, vector<1x8xf32>
    %46 = vector.shape_cast %45 : vector<1x8xf32> to vector<8xf32>
    %47 = vector.shape_cast %44 : vector<8xf32> to vector<1x8xf32>
    tpu.vector_store %arg12[%c0_26, %c0_27], %47 {strides = array<i32>} : memref<1x8xf32, #tpu.memory_space<vmem>>, vector<1x8xf32>,
    return
  }
  func.func @transform_0(%arg0: i32) -> (i32, i32) {
    %c0_i32 = arith.constant 0 : i32
    %c0_i32_0 = arith.constant 0 : i32
    return %arg0, %c0_i32 : i32, i32
  }
  func.func @transform_1(%arg0: i32) -> (i32, i32) {
    %c0_i32 = arith.constant 0 : i32
    %c0_i32_0 = arith.constant 0 : i32
    return %arg0, %c0_i32 : i32, i32
  }
  func.func @transform_2(%arg0: i32) -> (i32, i32) {
    %c0_i32 = arith.constant 0 : i32
    %c0_i32_0 = arith.constant 0 : i32
    %c0_i32_1 = arith.constant 0 : i32
    return %c0_i32, %c0_i32_0 : i32, i32
  }
  func.func @transform_3(%arg0: i32) -> (i32, i32) {
    %c0_i32 = arith.constant 0 : i32
    %c0_i32_0 = arith.constant 0 : i32
    %c0_i32_1 = arith.constant 0 : i32
    return %c0_i32, %c0_i32_0 : i32, i32
  }
  func.func @transform_4(%arg0: i32) -> (i32, i32) {
    %c0_i32 = arith.constant 0 : i32
    %c0_i32_0 = arith.constant 0 : i32
    %c0_i32_1 = arith.constant 0 : i32
    return %c0_i32, %c0_i32_0 : i32, i32
  }
  func.func @transform_5(%arg0: i32) -> (i32, i32) {
    %c0_i32 = arith.constant 0 : i32
    %c0_i32_0 = arith.constant 0 : i32
    %c0_i32_1 = arith.constant 0 : i32
    return %c0_i32, %c0_i32_0 : i32, i32
  }
  func.func @transform_6(%arg0: i32) -> (i32, i32) {
    %c0_i32 = arith.constant 0 : i32
    %c0_i32_0 = arith.constant 0 : i32
    %c0_i32_1 = arith.constant 0 : i32
    return %c0_i32, %c0_i32_0 : i32, i32
  }
  func.func @transform_7(%arg0: i32) -> (i32, i32) {
    %c0_i32 = arith.constant 0 : i32
    %c0_i32_0 = arith.constant 0 : i32
    %c0_i32_1 = arith.constant 0 : i32
    return %c0_i32, %c0_i32_0 : i32, i32
  }
  func.func @transform_8(%arg0: i32) -> (i32, i32) {
    %c0_i32 = arith.constant 0 : i32
    %c0_i32_0 = arith.constant 0 : i32
    %c0_i32_1 = arith.constant 0 : i32
    return %c0_i32, %c0_i32_0 : i32, i32
  }
  func.func @transform_9(%arg0: i32) -> (i32, i32) {
    %c0_i32 = arith.constant 0 : i32
    %c0_i32_0 = arith.constant 0 : i32
    %c0_i32_1 = arith.constant 0 : i32
    return %c0_i32, %c0_i32_0 : i32, i32
  }
  func.func @transform_10(%arg0: i32) -> i32 {
    %c0_i32 = arith.constant 0 : i32
    %c0_i32_0 = arith.constant 0 : i32
    return %c0_i32 : i32
  }
  func.func @transform_11(%arg0: i32) -> (i32, i32) {
    %c0_i32 = arith.constant 0 : i32
    %c0_i32_0 = arith.constant 0 : i32
    return %arg0, %c0_i32 : i32, i32
  }
}

</mosaic_0001>

<bundles_post_ra>
// kernel: tpu_custom_call.1
= control target key start
LH: loop header
LB: loop body
LE: loop exit
PB: predicated region body
PF: predicated region fallthrough
CT: control target
= control target key end

     0   :  { %v1785_v2 = vmov 1   ;;  %v1786_v3 = vmov 0   ;;  %v1787_v15 = vmov 0.0|0.0   ;;  %vm1788_vm0 = vmmov 0   ;;  %s2261_s0 = inlined_call_operand.vmem [shape: bf16[2,1216], index: 0, kind: input, shape index: {}]   ;;  %s2262_s1 = inlined_call_operand.vmem [shape: bf16[2,2], index: 1, kind: input, shape index: {}]   ;;  %s2263_s2 = inlined_call_operand.vmem [shape: f32[2,64], index: 2, kind: input, shape index: {}]   ;;  %s2264_s3 = inlined_call_operand.vmem [shape: f32[1,64], index: 3, kind: input, shape index: {}]   ;;  %s2265_s4 = inlined_call_operand.vmem [shape: f32[64,32], index: 4, kind: input, shape index: {}]   ;;  %s2266_s5 = inlined_call_operand.vmem [shape: f32[1,32], index: 5, kind: input, shape index: {}]   ;;  %s2267_s6 = inlined_call_operand.vmem [shape: bf16[1216,64], index: 6, kind: input, shape index: {}]   ;;  %s2268_s7 = inlined_call_operand.vmem [shape: f32[32,64], index: 7, kind: input, shape index: {}]   ;;  %s2269_s8 = inlined_call_operand.vmem [shape: f32[1,64], index: 8, kind: input, shape index: {}]   ;;  %s2270_s9 = inlined_call_operand.vmem [shape: f32[1,64], index: 9, kind: input, shape index: {}]   ;;  %s2271_s10 = inlined_call_operand.<no memory space> [shape: f32[1], index: 10, kind: input, shape index: {}]   ;;  %s2272_s11 = inlined_call_operand.hbm [shape: f32[1,8], index: 11, kind: output, shape index: {}]  }
   0x1   :  { %v41_v0 = vld [vmem:[%s2262_s1] sm:$0x1]  ;;  %v42_v1 = vld [vmem:[%s2262_s1 + $0x1] sm:$0x1]  ;;  %1665 = vset.pattern.permute.xlu1 %v1785_v2  ;;  %1654 = vset.pattern.permute.xlu0 %v1786_v3  ;;  %v43_v6 = vld [vmem:[%s2262_s1 + $0x2] sm:$0x1]  ;;  %v58_v28 = vlaneseq }
   0x2   :  { %v46_v4 = vunpack.c.l.bf16 %v41_v0  ;;  %v47_v5 = vunpack.c.l.bf16 %v42_v1  ;;  %v44_v7 = vld [vmem:[%s2262_s1 + $0x3] sm:$0x1]  ;;  %v48_v8 = vunpack.c.l.bf16 %v43_v6  ;;  %v242_v13 = vld [vmem:[%s2265_s4 + $0x8] sm:$0xff]  ;;  %1627 = vmatprep.subr.bf16.mxu0 %v1787_v15  ;;  %v243_v16 = vld [vmem:[%s2265_s4 + $0x10] sm:$0xff]  ;;  %v1789_v25 = vmov 0.0  }
   0x3   :  { %v49_v9 = vunpack.c.l.bf16 %v44_v7  ;;  %v241_v12 = vld [vmem:[%s2265_s4] sm:$0xff]  ;;  %v244_v17 = vld [vmem:[%s2265_s4 + $0x18] sm:$0xff]  ;;  %v246_v20 = vld [vmem:[%s2265_s4 + $0x28] sm:$0xff]  ;;  %1613 = vmatprep.mubr.msk.f32.mxu0 %vm1788_vm0, %v1789_v25  ;;  %v1790_v26 = vmov 1966171168   ;;  %v1908_v33 = vshrl.u32 %v58_v28, 7 }
   0x4   :  { %v1666_v10 = vpack.i.bf16 %v47_v5, %v46_v4  ;;  %v1628_v14 = vpack.c.bf16 %v242_v13, %v241_v12  ;;  %v1631_v18 = vpack.c.bf16 %v244_v17, %v243_v16  ;;  %v245_v19 = vld [vmem:[%s2265_s4 + $0x20] sm:$0xff]  ;;  %v247_v22 = vld [vmem:[%s2265_s4 + $0x30] sm:$0xff]  ;;  %v248_v23 = vld [vmem:[%s2265_s4 + $0x38] sm:$0xff]  ;;  %v602_v27 = vunpack.c.l.s4 %v1790_v26 }
   0x5   :  { %v1671_v11 = vpack.i.bf16 %v49_v9, %v48_v8  ;;  %v1634_v21 = vpack.c.bf16 %v246_v20, %v245_v19  ;;  %v1637_v24 = vpack.c.bf16 %v248_v23, %v247_v22  ;;  %v1677_v30 = vld [vmem:[%s2267_s6 + $0x40] sm:$0xff]   ;;  %v1679_v32 = vld [vmem:[%s2267_s6 + $0x48] sm:$0xff]   ;;  %v1681_v36 = vld [vmem:[%s2267_s6 + $0x50] sm:$0xff]  }
   0x6   :  { %1667 = vperm.xlu1 %1665, %v1666_v10   ;;  %1656 = vperm.xlu0 %1654, %v1666_v10   ;;  %v603_v29 = vunpack.c.0.s8 %v602_v27  ;;  %v1678_v31 = vld [vmem:[%s2267_s6] sm:$0xff]   ;;  %v1680_v35 = vld [vmem:[%s2267_s6 + $0x8] sm:$0xff]   ;;  %v1682_v39 = vld [vmem:[%s2267_s6 + $0x10] sm:$0xff]  }
   0x7   :  { %1629 = vmatpush3.bf16.msra.mxu0 %v1628_v14  ;;  %1509 = vmatprep.subr.bf16.mxu1 %v1677_v30  ;;  %v1693_v37 = vld [vmem:[%s2261_s0] ss:$10 sps:$4 sm:$0xff]   ;;  %v1683_v41 = vld [vmem:[%s2267_s6 + $0x58] sm:$0xff]   ;;  %v1689_v50 = vld [vmem:[%s2267_s6 + $0x70] sm:$0xff]  }
   0x8   :  { %1630 = vmatprep.subr.bf16.mxu0 %v1787_v15  ;;  %v1911_v34 = vsub.s32 %v603_v29, %v1908_v33  ;;  %1510 = vmatpush3.bf16.msra.mxu1 %v1678_v31  ;;  %v1696_v38 = vld [vmem:[%s2261_s0 + $0x14] ss:$10 sps:$4 sm:$0xff]   ;;  %v1687_v48 = vld [vmem:[%s2267_s6 + $0x68] sm:$0xff]  }
   0x9   :  { %1511 = vmatprep.subr.bf16.mxu1 %v1679_v32  ;;  %v1684_v43 = vld [vmem:[%s2267_s6 + $0x18] sm:$0xff]   ;;  %v1685_v44 = vld [vmem:[%s2267_s6 + $0x60] sm:$0xff]   ;;  %v1688_v49 = vld [vmem:[%s2267_s6 + $0x28] sm:$0xff]  }
   0xa   :  { %1672 = vperm.xlu1 %1665, %v1671_v11   ;;  %1661 = vperm.xlu0 %1654, %v1671_v11   ;;  %v607_v40 = vrot.slane %v1693_v37, %v1911_v34  ;;  %v621_v42 = vrot.slane %v1696_v38, %v1911_v34  ;;  %v1686_v47 = vld [vmem:[%s2267_s6 + $0x20] sm:$0xff]   ;;  %v1690_v51 = vld [vmem:[%s2267_s6 + $0x30] sm:$0xff]   ;;  %v1691_v52 = vld [vmem:[%s2267_s6 + $0x78] sm:$0xff]  }
   0xb   :  { %1632 = vmatpush3.bf16.msra.mxu0 %v1631_v18  ;;  %v1692_v53 = vld [vmem:[%s2267_s6 + $0x38] sm:$0xff]   ;;  %v1699_v54 = vld [vmem:[%s2267_s6 + $0x140] sm:$0xff]   ;;  %v1701_v58 = vld [vmem:[%s2267_s6 + $0x148] sm:$0xff]  }
   0xc   :  { %1633 = vmatprep.subr.bf16.mxu0 %v1787_v15  ;;  %1512 = vmatpush3.bf16.msra.mxu1 %v1680_v35  ;;  %v630_v45 = vcombine.high %v607_v40, %v621_v42  ;;  %v629_v55 = vcombine.low %v607_v40, %v621_v42  ;;  %v1700_v56 = vld [vmem:[%s2267_s6 + $0x100] sm:$0xff]   ;;  %v1702_v59 = vld [vmem:[%s2267_s6 + $0x108] sm:$0xff]   ;;  %v1703_v60 = vld [vmem:[%s2267_s6 + $0x150] sm:$0xff]  }
   0xd   :  { %1513 = vmatprep.subr.bf16.mxu1 %v1681_v36  ;;  %v1704_v61 = vld [vmem:[%s2267_s6 + $0x110] sm:$0xff]  }
   0xe   :  { %1676 = vset.pattern.permute.xlu0 %v1785_v2  ;;  %v1940_v46 = vrot.slane %v630_v45, %v1911_v34  ;;  %v1971_v57 = vrot.slane %v629_v55, %v1911_v34 }
   0xf   :  { %1635 = vmatpush3.bf16.msra.mxu0 %v1634_v21 }
  0x10   :  { %1636 = vmatprep.subr.bf16.mxu0 %v1787_v15  ;;  %1514 = vmatpush3.bf16.msra.mxu1 %v1682_v39 }
  0x11   :  { %1515 = vmatprep.subr.bf16.mxu1 %v1683_v41  ;;  %1197 = vmatprep.mubr.bf16.mxu1 %v1940_v46 }
  0x13   :  { %1638 = vmatpush3.bf16.msra.mxu0 %v1637_v24 }
  0x14   :  { %1639 = vmatprep.subr.bf16.mxu0 %v1787_v15  ;;  %1516 = vmatpush3.bf16.msra.mxu1 %v1684_v43 }
  0x15   :  { %1517 = vmatprep.subr.bf16.mxu1 %v1685_v44 }
  0x18   :  { %1518 = vmatpush3.bf16.msra.mxu1 %v1686_v47 }
  0x19   :  { %1519 = vmatprep.subr.bf16.mxu1 %v1687_v48 }
  0x1c   :  { %1520 = vmatpush3.bf16.msra.mxu1 %v1688_v49 }
  0x1d   :  { %1521 = vmatprep.subr.bf16.mxu1 %v1689_v50 }
  0x20   :  { %1522 = vmatpush3.bf16.msra.mxu1 %v1690_v51 }
  0x21   :  { %1523 = vmatprep.subr.bf16.mxu1 %v1691_v52 }
  0x24   :  { %1524 = vmatpush3.bf16.msra.mxu1 %v1692_v53 }
  0x25   :  { %1553 = vmatprep.subr.bf16.mxu1 %v1699_v54 }
  0x27   :  { %1198 = vmatmul.mubr.bf16.vlgmr.msra.gmra.mrb[0].mxu1 %v1971_v57 }
  0x28   :  { %1554 = vmatpush3.bf16.msra.mxu1 %v1700_v56 }
  0x29   :  { %1555 = vmatprep.subr.bf16.mxu1 %v1701_v58 }
  0x2c   :  { %1556 = vmatpush3.bf16.msra.mxu1 %v1702_v59 }
  0x2d   :  { %1557 = vmatprep.subr.bf16.mxu1 %v1703_v60 }
  0x2e   :  { %17 = vsyncpa [#allocation4], 0  ;;  %v1791_v62 = vmov 1983009808   ;;  %v174_v1 = vsub.s32 1, %v1908_v33  ;;  %v100_v2 = vsub.s32 0, %v1908_v33 }
  0x2f   :  { %v105_v63 = vunpack.c.l.s4 %v1791_v62  ;;  %v45_v4 = vld [vmem:[%s2263_s2] sm:$0x3]  ;;  %v1792_v5 = vmov 269488144   ;;  %vm277_vm1 = vcmask 523264   ;;  %vm515_vm2 = vcmask 261120  }
  0x30   :  { %1558 = vmatpush3.bf16.msra.mxu1 %v1704_v61  ;;  %v56_v6 = vunpack.c.l.s4 %v1792_v5  ;;  %v175_v8 = vrot.slane %v45_v4, %v174_v1  ;;  %v101_v9 = vrot.slane %v45_v4, %v100_v2  ;;  %v1412_v14 = vld [vmem:[%s2264_s3] ss:$0 sm:$0xff]  ;;  %vm1396_vm3 = vcmask 57344  }
  0x31   :  { %v106_v0 = vunpack.c.0.s8 %v105_v63  ;;  %v212_v26 = vcombine.high %v1412_v14, %v1412_v14 }
  0x32   :  { %v57_v10 = vunpack.c.0.s8 %v56_v6  ;;  %v177_v11 = vcombine.high %v175_v8, %v175_v8  ;;  %v103_v16 = vcombine.high %v101_v9, %v101_v9 }
  0x33   :  { %v1992_v7 = vsub.s32 %v106_v0, %v1908_v33 }
  0x34   :  { %v60_v17 = vsub.s32 %v57_v10, %v1908_v33 }
  0x35   :  { %v184_v12 = vrot.slane %v175_v8, %v1992_v7  ;;  %v110_v13 = vrot.slane %v101_v9, %v1992_v7  ;;  %v219_v18 = vrot.slane %v1412_v14, %v1992_v7  ;;  %v191_v19 = vrot.slane %v177_v11, %v1992_v7 }
  0x36   :  { %v117_v24 = vrot.slane %v103_v16, %v1992_v7  ;;  %v226_v42 = vrot.slane %v212_v26, %v1992_v7  ;;  %v511_v16 = vld [vmem:[%s2268_s7] sm:$0xff] }
  0x37   :  { %v192_v20 = vcombine.high %v184_v12, %v184_v12  ;;  %v118_v22 = vcombine.high %v110_v13, %v110_v13  ;;  %v227_v38 = vcombine.high %v219_v18, %v219_v18  ;;  %v193_v39 = vcombine.high %v191_v19, %v191_v19  ;;  %v1709_v26 = vld [vmem:[%s2267_s6 + $0x160] sm:$0xff]  }
  0x38   :  { %v119_v41 = vcombine.high %v117_v24, %v117_v24  ;;  %v228_v62 = vcombine.high %v226_v42, %v226_v42 }
  0x85   :  { %v1668_v21 = vpop.permute.xlu1 %1667  ;;  %v1657_v23 = vpop.permute.xlu0 %1656 }
  0x86   :  { %v1670_v27 = vunpack.i.h.bf16 %v1668_v21  ;;  %v1669_v29 = vunpack.i.l.bf16 %v1668_v21  ;;  %v1659_v30 = vunpack.i.h.bf16 %v1657_v23  ;;  %v1658_v31 = vunpack.i.l.bf16 %v1657_v23  ;;  %v514_v23 = vld [vmem:[%s2268_s7 + $0x18] sm:$0xff] }
  0x88   :  { %v149_v32 = vrot.slane %v1670_v27, %v60_v17  ;;  %v138_v35 = vrot.slane %v1669_v29, %v60_v17  ;;  %v73_v36 = vrot.slane %v1659_v30, %v60_v17  ;;  %v61_v37 = vrot.slane %v1658_v31, %v60_v17  ;;  %v1710_v27 = vld [vmem:[%s2267_s6 + $0x120] sm:$0xff]   ;;  %v1713_v29 = vld [vmem:[%s2267_s6 + $0x168] sm:$0xff]  }
  0x89   :  { %v1673_v40 = vpop.permute.xlu1 %1672  ;;  %v1662_v43 = vpop.permute.xlu0 %1661  ;;  %v1714_v30 = vld [vmem:[%s2267_s6 + $0x128] sm:$0xff]  }
  0x8a   :  { %v199_v44 = vmul.f32 %v192_v20, %v149_v32  ;;  %v198_v45 = vmul.f32 %v184_v12, %v138_v35  ;;  %v125_v47 = vmul.f32 %v118_v22, %v73_v36  ;;  %v124_v48 = vmul.f32 %v110_v13, %v61_v37  ;;  %v513_v22 = vld [vmem:[%s2268_s7 + $0x10] sm:$0xff]  ;;  %v1698_v32 = vld [vmem:[%s2261_s0 + $0x18] ss:$10 sps:$4 sm:$0xff]  }
  0x8b   :  { %v1675_v49 = vunpack.i.h.bf16 %v1673_v40  ;;  %v1674_v50 = vunpack.i.l.bf16 %v1673_v40  ;;  %v1664_v51 = vunpack.i.h.bf16 %v1662_v43  ;;  %v1663_v52 = vunpack.i.l.bf16 %v1662_v43  ;;  %v1695_v31 = vld [vmem:[%s2261_s0 + $0x4] ss:$10 sps:$4 sm:$0xff]   ;;  %v1721_v37 = vld [vmem:[%s2267_s6 + $0x178] sm:$0xff]  }
  0x8c   :  { %v203_v53 = vadd.f32 %v199_v44, %v125_v47  ;;  %v202_v54 = vadd.f32 %v198_v45, %v124_v48  ;;  %v1717_v35 = vld [vmem:[%s2267_s6 + $0x170] sm:$0xff]   ;;  %v1722_v40 = vld [vmem:[%s2267_s6 + $0x138] sm:$0xff]   ;;  %v1725_v45 = vld [vmem:[%s2267_s6 + $0x200] sm:$0xff]  }
  0x8d   :  { %v171_v55 = vrot.slane %v1675_v49, %v60_v17  ;;  %v160_v56 = vrot.slane %v1674_v50, %v60_v17  ;;  %v97_v58 = vrot.slane %v1664_v51, %v60_v17  ;;  %v85_v59 = vrot.slane %v1663_v52, %v60_v17  ;;  %v512_v17 = vld [vmem:[%s2268_s7 + $0x8] sm:$0xff]  ;;  %v1718_v36 = vld [vmem:[%s2267_s6 + $0x130] sm:$0xff]   ;;  %v1734_v49 = vld [vmem:[%s2267_s6 + $0x218] sm:$0xff]  }
  0x8e   :  { %v234_v60 = vadd.f32 %v227_v38, %v203_v53  ;;  %v233_v61 = vadd.f32 %v219_v18, %v202_v54  ;;  %v1640_v20 = vpack.c.bf16 %v512_v17, %v511_v16  ;;  %v614_v38 = vrot.slane %v1695_v31, %v1911_v34  ;;  %v1728_v47 = vld [vmem:[%s2267_s6 + $0x208] sm:$0xff]   ;;  %v1731_v48 = vld [vmem:[%s2267_s6 + $0x210] sm:$0xff]   ;;  %v1737_v50 = vld [vmem:[%s2267_s6 + $0x220] sm:$0xff]  }
  0x8f   :  { %v201_v63 = vmul.f32 %v193_v39, %v171_v55  ;;  %v200_v0 = vmul.f32 %v191_v19, %v160_v56  ;;  %v127_v1 = vmul.f32 %v119_v41, %v97_v58  ;;  %v126_v2 = vmul.f32 %v117_v24, %v85_v59  ;;  %v1705_v24 = vld [vmem:[%s2267_s6 + $0x158] sm:$0xff]   ;;  %v1740_v51 = vld [vmem:[%s2267_s6 + $0x228] sm:$0xff]   ;;  %v1743_v52 = vld [vmem:[%s2267_s6 + $0x230] sm:$0xff]  }
  0x90   :  { %v238_v4 = vmax.f32 %v234_v60, 0.0  ;;  %v237_v5 = vmax.f32 %v233_v61, 0.0  ;;  %1559 = vmatprep.subr.bf16.mxu1 %v1705_v24  ;;  %v628_v39 = vrot.slane %v1698_v32, %v1911_v34  ;;  %v1746_v53 = vld [vmem:[%s2267_s6 + $0x238] sm:$0xff]   ;;  %v1749_v54 = vld [vmem:[%s2267_s6 + $0x240] sm:$0xff]   ;;  %v1752_v55 = vld [vmem:[%s2267_s6 + $0x248] sm:$0xff]  }
  0x91   :  { %v205_v6 = vadd.f32 %v201_v63, %v127_v1  ;;  %v204_v8 = vadd.f32 %v200_v0, %v126_v2  ;;  %v1755_v56 = vld [vmem:[%s2267_s6 + $0x250] sm:$0xff]   ;;  %v1760_v59 = vld [vmem:[%s2261_s0 + $0x1c] ss:$10 sps:$4 sm:$0x33]   ;;  %v1711_v16 = vld [vmem:[%s2267_s6 + $0xc8] sm:$0xff]  }
  0x92   :  { %v260_v13 = vcombine.low %v237_v5, %v238_v4  ;;  %v632_v41 = vcombine.high %v614_v38, %v628_v39  ;;  %v1759_v58 = vld [vmem:[%s2261_s0 + $0x8] ss:$10 sps:$4 sm:$0x33]   ;;  %v680_v61 = vrot.slane %v1760_v59, %v1911_v34 }
  0x93   :  { %v236_v9 = vadd.f32 %v228_v62, %v205_v6  ;;  %v235_v10 = vadd.f32 %v226_v42, %v204_v8  ;;  %v631_v42 = vcombine.low %v614_v38, %v628_v39  ;;  %v673_v60 = vrot.slane %v1759_v58, %v1911_v34  ;;  %v1758_v62 = vld [vmem:[%s2267_s6 + $0x258] sm:$0xff]   ;;  %v1712_v17 = vld [vmem:[%s2267_s6 + $0x88] sm:$0xff]   ;;  %v1729_v24 = vld [vmem:[%s2267_s6 + $0xf0] sm:$0xff]  }
  0x94   :  { %v268_v18 = vrot.slane %v260_v13, %v1992_v7  ;;  %v2064_v43 = vrot.slane %v632_v41, %v1911_v34  ;;  %v663_v13 = vcombine.high %v1940_v46, %v1940_v46  ;;  %v1715_v46 = vld [vmem:[%s2267_s6 + $0xd0] sm:$0xff]   ;;  %v1738_v32 = vld [vmem:[%s2267_s6 + $0x1c8] sm:$0xff]   ;;  %v1745_v38 = vld [vmem:[%s2267_s6 + $0x198] sm:$0xff]  }
  0x95   :  { %v240_v11 = vmax.f32 %v236_v9, 0.0  ;;  %v239_v12 = vmax.f32 %v235_v10, 0.0  ;;  %v2068_v44 = vrot.slane %v631_v42, %v1911_v34  ;;  %v682_v63 = vcombine.high %v673_v60, %v680_v61  ;;  %v1413_v9 = vld [vmem:[%s2266_s5] ss:$0 sm:$0xff]  ;;  %v1750_v41 = vld [vmem:[%s2267_s6 + $0x1e8] sm:$0xff]  }
  0x96   :  { %1277 = vmatprep.mubr.bf16.mxu1 %v2064_v43  ;;  %v681_v0 = vcombine.low %v673_v60, %v680_v61  ;;  %v664_v31 = vcombine.high %v2064_v43, %v2064_v43  ;;  %v1747_v39 = vld [vmem:[%s2267_s6 + $0x1e0] sm:$0xff]   ;;  %v1751_v42 = vld [vmem:[%s2267_s6 + $0x1a8] sm:$0xff]   ;;  %v1753_v43 = vld [vmem:[%s2267_s6 + $0x1f0] sm:$0xff]  }
  0x97   :  { %v261_v14 = vcombine.low %v239_v12, %v240_v11  ;;  %v696_v1 = vrot.slane %v682_v63, %v1911_v34 }
  0x98   :  { %v689_v2 = vrot.slane %v681_v0, %v1911_v34  ;;  %v1708_v34 = vld [vmem:[%s2267_s6 + $0x80] sm:$0xff]  }
  0x99   :  { %v275_v19 = vrot.slane %v261_v14, %v1992_v7  ;;  %v1643_v7 = vpack.c.bf16 %v514_v23, %v513_v22  ;;  %v1724_v22 = vld [vmem:[%s2267_s6 + $0xa0] sm:$0xff]   ;;  %v1726_v23 = vld [vmem:[%s2267_s6 + $0xe8] sm:$0xff]  }
  0x9b   :  { %v276_v21 = vcombine.low %v268_v18, %v275_v19  ;;  %v1716_v18 = vld [vmem:[%s2267_s6 + $0x90] sm:$0xff]   ;;  %v1719_v19 = vld [vmem:[%s2267_s6 + $0xd8] sm:$0xff]  }
  0x9d   :  { %1614 = vmatmul.mubr.msk.f32.vlgmr.msra.gmra.mrb[0].mxu0 %vm277_vm1, %v276_v21  ;;  %v1723_v21 = vld [vmem:[%s2267_s6 + $0xe0] sm:$0xff]  }
  0x9e   :  { %1641 = vmatpush3.bf16.msra.mxu0 %v1640_v20  ;;  %1624 = vmatprep.mubr.msk.f32.mxu0 %vm1788_vm0, %v1789_v25  ;;  %v1706_v25 = vld [vmem:[%s2267_s6 + $0x118] sm:$0xff]  }
  0x9f   :  { %1642 = vmatprep.subr.bf16.mxu0 %v1787_v15  ;;  %v1707_v15 = vld [vmem:[%s2267_s6 + $0xc0] sm:$0xff]   ;;  %1560 = vmatpush3.bf16.msra.mxu1 %v1706_v25  ;;  %v1720_v20 = vld [vmem:[%s2267_s6 + $0x98] sm:$0xff]   ;;  %v1730_v25 = vld [vmem:[%s2267_s6 + $0xb0] sm:$0xff]  }
  0xa0   :  { %1561 = vmatprep.subr.bf16.mxu1 %v1709_v26  ;;  %v1733_v26 = vld [vmem:[%s2267_s6 + $0xb8] sm:$0xff]  }
  0xa2   :  { %1644 = vmatpush3.bf16.msra.mxu0 %v1643_v7  ;;  %v1727_v7 = vld [vmem:[%s2267_s6 + $0xa8] sm:$0xff]  }
  0xa3   :  { %1531 = vmatprep.subr.bf16.mxu0 %v1707_v15  ;;  %1562 = vmatpush3.bf16.msra.mxu1 %v1710_v27  ;;  %v1732_v15 = vld [vmem:[%s2267_s6 + $0xf8] sm:$0xff]   ;;  %v1735_v27 = vld [vmem:[%s2267_s6 + $0x1c0] sm:$0xff]  }
  0xa4   :  { %1563 = vmatprep.subr.bf16.mxu1 %v1713_v29  ;;  %v661_v29 = vcombine.high %v1971_v57, %v1971_v57  ;;  %v1741_v57 = vld [vmem:[%s2267_s6 + $0x1d0] sm:$0xff]  }
  0xa7   :  { %1564 = vmatpush3.bf16.msra.mxu1 %v1714_v30  ;;  %v1736_v30 = vld [vmem:[%s2267_s6 + $0x180] sm:$0xff]  }
  0xa8   :  { %1565 = vmatprep.subr.bf16.mxu1 %v1717_v35  ;;  %v1739_v35 = vld [vmem:[%s2267_s6 + $0x188] sm:$0xff]  }
  0xab   :  { %1566 = vmatpush3.bf16.msra.mxu1 %v1718_v36  ;;  %v1742_v36 = vld [vmem:[%s2267_s6 + $0x190] sm:$0xff]  }
  0xac   :  { %1567 = vmatprep.subr.bf16.mxu1 %v1721_v37  ;;  %v1744_v37 = vld [vmem:[%s2267_s6 + $0x1d8] sm:$0xff]  }
  0xaf   :  { %1568 = vmatpush3.bf16.msra.mxu1 %v1722_v40  ;;  %v1748_v40 = vld [vmem:[%s2267_s6 + $0x1a0] sm:$0xff]  }
  0xb0   :  { %1325 = vmatprep.subr.bf16.mxu1 %v1786_v3 }
  0xb2   :  { %1278 = vmatmul.mubr.bf16.vlgmr.msra.gmra.mrb[4].mxu1 %v2068_v44 }
  0xb3   :  { %1326 = vmatpush1.bf16.msra.mxu1 %v1725_v45  ;;  %1492 = vmatprep.mubr.msk.bf16.mxu1 %vm277_vm1, %v696_v1  ;;  %v1754_v45 = vld [vmem:[%s2267_s6 + $0x1b0] sm:$0xff]  }
  0xb4   :  { %1327 = vmatprep.subr.bf16.mxu1 %v1786_v3 }
  0xb7   :  { %1328 = vmatpush1.bf16.msra.mxu1 %v1728_v47  ;;  %v1756_v47 = vld [vmem:[%s2267_s6 + $0x1f8] sm:$0xff]  }
  0xb8   :  { %1329 = vmatprep.subr.bf16.mxu1 %v1786_v3 }
  0xbb   :  { %1330 = vmatpush1.bf16.msra.mxu1 %v1731_v48  ;;  %v1757_v48 = vld [vmem:[%s2267_s6 + $0x1b8] sm:$0xff]  }
  0xbc   :  { %1331 = vmatprep.subr.bf16.mxu1 %v1786_v3 }
  0xbf   :  { %1332 = vmatpush1.bf16.msra.mxu1 %v1734_v49  ;;  %v662_v49 = vcombine.high %v2068_v44, %v2068_v44 }
  0xc0   :  { %1333 = vmatprep.subr.bf16.mxu1 %v1786_v3 }
  0xc3   :  { %1334 = vmatpush1.bf16.msra.mxu1 %v1737_v50 }
  0xc4   :  { %1335 = vmatprep.subr.bf16.mxu1 %v1786_v3 }
  0xc7   :  { %1336 = vmatpush1.bf16.msra.mxu1 %v1740_v51 }
  0xc8   :  { %1337 = vmatprep.subr.bf16.mxu1 %v1786_v3 }
  0xcb   :  { %1338 = vmatpush1.bf16.msra.mxu1 %v1743_v52 }
  0xcc   :  { %1339 = vmatprep.subr.bf16.mxu1 %v1786_v3 }
  0xcf   :  { %1340 = vmatpush1.bf16.msra.mxu1 %v1746_v53 }
  0xd0   :  { %1341 = vmatprep.subr.bf16.mxu1 %v1786_v3 }
  0xd3   :  { %1342 = vmatpush1.bf16.msra.mxu1 %v1749_v54 }
  0xd4   :  { %1343 = vmatprep.subr.bf16.mxu1 %v1786_v3 }
  0xd7   :  { %1344 = vmatpush1.bf16.msra.mxu1 %v1752_v55 }
  0xd8   :  { %1345 = vmatprep.subr.bf16.mxu1 %v1786_v3 }
  0xdb   :  { %1346 = vmatpush1.bf16.msra.mxu1 %v1755_v56 }
  0xdc   :  { %1347 = vmatprep.subr.bf16.mxu1 %v1786_v3 }
  0xdf   :  { %1348 = vmatpush1.bf16.msra.mxu1 %v1758_v62 }
  0xe2   :  { %1358 = vmatmul.mubr.bf16.vlgmr.msra.gmra.mrb[8].mxu1 %v689_v2 }
  0xfa   :  { %v1525_v4 = vpop.f32.mrb[0].mxu1 }
  0xfb   :  { %v1526_v5 = vpop.f32.mrb[1].mxu1 }
  0xfc   :  { %v2130_v6 = vadd.f32 %v1526_v5, %v1525_v4  ;;  %v1528_v8 = vpop.f32.mrb[2].mxu1 }
  0xfd   :  { %v1529_v3 = vpop.f32.mrb[3].mxu1 }
 0x170   :  { %v346_v10 = vpop.f32.mrb[0].mxu0 }
 0x171   :  { %v347_v11 = vadd.f32 %v1413_v9, %v346_v10  ;;  %v1615_v12 = vpop.f32.mrb[1].mxu0 }
 0x173   :  { %v350_v14 = vmax.f32 %v347_v11, 0.0 }
 0x175   :  { %1625 = vmatmul.mubr.msk.f32.vlgmr.msra.gmra.mrb[2].mxu0 %vm515_vm2, %v350_v14  ;;  %v1494_v14 = vld [vmem:[%s2270_s9] ss:$0 sm:$0xff] }
 0x176   :  { %1532 = vmatpush3.bf16.msra.mxu0 %v1708_v34  ;;  %1237 = vmatprep.mubr.bf16.mxu0 %v663_v13  ;;  %v1493_v13 = vld [vmem:[%s2269_s8] ss:$0 sm:$0xff]  ;;  %s1793_s8 = smov [#allocation3]  }
 0x177   :  { %1533 = vmatprep.subr.bf16.mxu0 %v1711_v16  ;;  %s1404_s13 = sshll.u32 %s1793_s8, 4  ;;  %s1405_s13 = int_to_ptr.vmem [resolvable:$true] %s1404_s13 }
 0x178   :  { %s1761_s9 = scalar_lea.vmem %s1405_s13, 16  ;;  %s1765_s14 = scalar_lea.vmem %s1405_s13, 32 }
 0x179   :  { %p1762_p0 = scmp.ne.s32.totalorder %s1405_s13, %s1761_s9  ;;  %p1766_p1 = scmp.lt.s32.totalorder %s1405_s13, %s1405_s13 }
 0x17a   :  { %1534 = vmatpush3.bf16.msra.mxu0 %v1712_v17  ;;  %p1767_p2 = scmp.lt.s32.totalorder %s1765_s14, %s1761_s9 }
 0x17b   :  { %1535 = vmatprep.subr.bf16.mxu0 %v1715_v46 }
 0x17c   :  { %p1768_p3 = por %p1767_p2, %p1766_p1 }
 0x17e   :  { %1536 = vmatpush3.bf16.msra.mxu0 %v1716_v18  ;;  %v1390_v18 = vand.u32 127, %v58_v28  ;;  %p1769_p4 = pnand %p1768_p3, %p1762_p0 }
 0x17f   :  { %1537 = vmatprep.subr.bf16.mxu0 %v1719_v19  ;;  %v1386_v19 = vstv %s2271_s10 }
 0x182   :  { %1538 = vmatpush3.bf16.msra.mxu0 %v1720_v20  ;;  %v1393_v20 = vsub.s32 %v1390_v18, %v1908_v33 }
 0x183   :  { %1539 = vmatprep.subr.bf16.mxu0 %v1723_v21 }
 0x185   :  { %v1569_v50 = vpop.f32.mrb[4].mxu1 }
 0x186   :  { %1540 = vmatpush3.bf16.msra.mxu0 %v1724_v22  ;;  %v1570_v51 = vpop.f32.mrb[5].mxu1 }
 0x187   :  { %1541 = vmatprep.subr.bf16.mxu0 %v1726_v23  ;;  %v1571_v52 = vadd.f32 %v1570_v51, %v1569_v50  ;;  %v1572_v53 = vpop.f32.mrb[6].mxu1 }
 0x188   :  { %v1573_v54 = vpop.f32.mrb[7].mxu1 }
 0x18a   :  { %1542 = vmatpush3.bf16.msra.mxu0 %v1727_v7 }
 0x18b   :  { %1543 = vmatprep.subr.bf16.mxu0 %v1729_v24 }
 0x18e   :  { %1544 = vmatpush3.bf16.msra.mxu0 %v1730_v25 }
 0x18f   :  { %1545 = vmatprep.subr.bf16.mxu0 %v1732_v15 }
 0x192   :  { %1546 = vmatpush3.bf16.msra.mxu0 %v1733_v26 }
 0x193   :  { %1575 = vmatprep.subr.bf16.mxu0 %v1735_v27 }
 0x195   :  { %1238 = vmatmul.mubr.bf16.vlgmr.msra.gmra.mrb[4].mxu0 %v661_v29 }
 0x196   :  { %1576 = vmatpush3.bf16.msra.mxu0 %v1736_v30  ;;  %1317 = vmatprep.mubr.bf16.mxu0 %v664_v31 }
 0x197   :  { %1577 = vmatprep.subr.bf16.mxu0 %v1738_v32 }
 0x19a   :  { %1578 = vmatpush3.bf16.msra.mxu0 %v1739_v35 }
 0x19b   :  { %1579 = vmatprep.subr.bf16.mxu0 %v1741_v57 }
 0x19e   :  { %1580 = vmatpush3.bf16.msra.mxu0 %v1742_v36 }
 0x19f   :  { %1581 = vmatprep.subr.bf16.mxu0 %v1744_v37 }
 0x1a2   :  { %1582 = vmatpush3.bf16.msra.mxu0 %v1745_v38 }
 0x1a3   :  { %1583 = vmatprep.subr.bf16.mxu0 %v1747_v39 }
 0x1a6   :  { %1584 = vmatpush3.bf16.msra.mxu0 %v1748_v40 }
 0x1a7   :  { %1585 = vmatprep.subr.bf16.mxu0 %v1750_v41 }
 0x1aa   :  { %1586 = vmatpush3.bf16.msra.mxu0 %v1751_v42 }
 0x1ab   :  { %1587 = vmatprep.subr.bf16.mxu0 %v1753_v43 }
 0x1ae   :  { %1588 = vmatpush3.bf16.msra.mxu0 %v1754_v45 }
 0x1af   :  { %1589 = vmatprep.subr.bf16.mxu0 %v1756_v47 }
 0x1b2   :  { %1590 = vmatpush3.bf16.msra.mxu0 %v1757_v48 }
 0x1b5   :  { %1318 = vmatmul.mubr.bf16.vlgmr.msra.gmra.mrb[8].mxu0 %v662_v49  ;;  %v1359_v55 = vpop.f32.mrb[8].mxu1 }
 0x1b6   :  { %v1361_v56 = vpop.f32.mrb[9].mxu1 }
 0x1b7   :  { %v1362_v58 = vpop.f32.mrb[10].mxu1 }
 0x1b8   :  { %v1363_v59 = vpop.f32.mrb[11].mxu1 }
 0x248   :  { %v585_v60 = vpop.f32.mrb[2].mxu0 }
 0x249   :  { %v1200_v61 = vadd.f32 %v2130_v6, %v585_v60  ;;  %v1626_v62 = vpop.f32.mrb[3].mxu0 }
 0x268   :  { %v1547_v63 = vpop.f32.mrb[4].mxu0 }
 0x269   :  { %v1548_v0 = vpop.f32.mrb[5].mxu0 }
 0x26a   :  { %v1549_v1 = vadd.f32 %v1548_v0, %v1547_v63  ;;  %v1550_v2 = vpop.f32.mrb[6].mxu0 }
 0x26b   :  { %v1551_v44 = vpop.f32.mrb[7].mxu0 }
 0x26c   :  { %v1240_v4 = vadd.f32 %v1549_v1, %v1200_v61 }
 0x26e   :  { %v1280_v5 = vadd.f32 %v1571_v52, %v1240_v4 }
 0x288   :  { %v1591_v8 = vpop.f32.mrb[8].mxu0 }
 0x289   :  { %v1592_v3 = vpop.f32.mrb[9].mxu0 }
 0x28a   :  { %v1593_v9 = vadd.f32 %v1592_v3, %v1591_v8  ;;  %v1594_v10 = vpop.f32.mrb[10].mxu0 }
 0x28b   :  { %v1595_v11 = vpop.f32.mrb[11].mxu0 }
 0x28c   :  { %v1320_v12 = vadd.f32 %v1593_v9, %v1280_v5 }
 0x28e   :  { %v1360_v34 = vadd.f32 %v1359_v55, %v1320_v12 }
 0x290   :  { %v1372_v6 = vadd.f32 %v1493_v13, %v1360_v34 }
 0x292   :  { %v1373_v16 = vmax.f32 %v1372_v6, 0.0 }
 0x294   :  { %v1381_v17 = vmul.f32 %v1494_v14, %v1373_v16 }
 0x296   :  { %v1382_v46 = vsel %vm277_vm1, %v1381_v17, 0.0 }
 0x297   :  { %1383 = vadd.xlane.f32.xlu0 %v1382_v46 }
 0x324   :  { %v1384_v21 = vpop.xlane.xlu0 %1383 }
 0x325   :  { %v1387_v22 = vadd.f32 %v1386_v19, %v1384_v21 }
 0x327   :  { %v1394_v23 = vrot.slane %v1387_v22, %v1393_v20 }
 0x329   :  { %1397 = vst.msk [vmem:[#allocation3] sm:$0x1] %vm1396_vm3, %v1394_v23 }
 0x32a   :  { %1772 = shalt.err (!%p1769_p4)
}
 0x32b   :  { %s1773_s16 = scalar_lea.hbm %s2272_s11, 16 }
 0x32c   :  { %p1774_p5 = scmp.ne.s32.totalorder %s2272_s11, %s1773_s16  ;;  %p1777_p6 = scmp.lt.u32.totalorder %s1773_s16, %s2272_s11 }
 0x32e   :  { %p1779_p7 = pnand %p1777_p6, %p1774_p5 }
 0x330   :  { %1782 = shalt.err (!%p1779_p7)
}
 0x331   :  { %1407 = dma.vmem_to_hbm [thread:$0]  %s1405_s13, 16, %s2272_s11, [#allocation4]  }
 0x332   :  { %1783 = dma.done.wait [#allocation4], 16  }
 0x333   :  { %1784 = vsyncadd [#allocation4], 4294967280 }
 0x334   :  { %1411 = vsyncpa [#allocation4], 1 }

</bundles_post_ra>
